<compile_context>
chip_gen: v5e
topology: v5e:2x2
jax: 0.10.0
libtpu: 0.0.40
codegen_flags: <defaults>
</compile_context>

<pallas_src>
import jax
import jax.numpy as jnp
import numpy as np
from jax import lax
from jax.experimental import pallas as pl
from jax.experimental.pallas import tpu as pltpu


def encoder_kernel(x_ref, w1_ref, w2_ref, o_ref):
    # x_ref:  (B, S, F) f32  -- raw input; mean over F done in-kernel (XLU/VPU,
    #                           free slots in this MXU-idle kernel)
    # w1_ref: (S, H)    f32  -- first Linear weight, pre-transposed once
    # w2_ref: (E, H)    f32  -- second Linear weight, natural lane-dense layout
    # o_ref:  (B, E)    f32
    mean = jnp.mean(x_ref[...], axis=-1)                       # (B, S)
    h = jnp.dot(mean, w1_ref[...],
                preferred_element_type=jnp.float32)            # (B, H) == mean @ W1^T
    h = jnp.maximum(h, 0.0)                                    # ReLU, f32
    out = lax.dot_general(h, w2_ref[...],
                          dimension_numbers=(((1,), (1,)), ((), ())),
                          preferred_element_type=jnp.float32)  # (B, E) == h @ W2^T
    o_ref[...] = out.astype(o_ref.dtype)


def prepare_weights(w1, w2):
    """One-time parameter repack (hoisted out of the forward hot path).

    w1: (H, S) PyTorch nn.Linear layout -> returned as (S, H), lane-dense.
    w2: (E, H) PyTorch nn.Linear layout -> returned UNCHANGED (already
        lane-dense; contracted on dim H inside the kernel).
    """
    return jnp.transpose(w1), w2


def encoder_forward(x, w1_t, w2):
    """x: (B, S, F) f32; w1_t: (S, H) f32; w2: (E, H) f32 (natural layout)."""
    B, S, F = x.shape
    S_, H = w1_t.shape
    E = w2.shape[0]
    assert S_ == S and w2.shape[1] == H

    flops = B * S * F + 2 * B * S * H + 2 * B * H * E
    bytes_accessed = 4 * (x.size + w1_t.size + w2.size + B * E)

    return pl.pallas_call(
        encoder_kernel,
        out_shape=jax.ShapeDtypeStruct((B, E), x.dtype),
        in_specs=[
            pl.BlockSpec(memory_space=pltpu.MemorySpace.VMEM),
            pl.BlockSpec(memory_space=pltpu.MemorySpace.VMEM),
            pl.BlockSpec(memory_space=pltpu.MemorySpace.VMEM),
        ],
        out_specs=pl.BlockSpec(memory_space=pltpu.MemorySpace.VMEM),
        cost_estimate=pl.CostEstimate(
            flops=flops, transcendentals=0, bytes_accessed=bytes_accessed),
    )(x, w1_t, w2)


if __name__ == "__main__":
    # Config implied by the module: seq_len = 8 (first Linear in-features),
    # encoder_hidden_size = 128, num_experts = 2. F = reduced feature dim.
    B, S, F = 2, 8, 16
    H, E = 128, 2

    key = jax.random.PRNGKey(0)
    kx, k1, k2 = jax.random.split(key, 3)

    x = jax.random.normal(kx, (B, S, F), dtype=jnp.float32)
    # PyTorch nn.Linear weight layout: (out_features, in_features), no bias.
    w1 = jax.random.normal(k1, (H, S), dtype=jnp.float32) * 0.1
    w2 = jax.random.normal(k2, (E, H), dtype=jnp.float32) * 0.1

    # One-time weight repack (parameter-init time, NOT per forward call).
    w1_t, w2_nat = prepare_weights(w1, w2)
    w1_t = jax.block_until_ready(w1_t)
    w2_nat = jax.block_until_ready(w2_nat)

    out = jax.block_until_ready(encoder_forward(x, w1_t, w2_nat))

    # Plain-JAX reference with the original PyTorch semantics
    # (mean over dim=-1, then x @ W^T twice with ReLU in between).
    mean = jnp.mean(x, axis=-1)
    ref = jnp.maximum(mean @ w1.T, 0.0) @ w2.T

    assert out.shape == (B, E)
    np.testing.assert_allclose(np.asarray(out), np.asarray(ref),
                               rtol=1e-5, atol=1e-5)
    print("KERNEL_OK")
</pallas_src>

<mosaic_0001>
module attributes {stable_mosaic.version = 11 : i64} {
  func.func @encoder_kernel(%arg0: memref<2x8x16xf32, #tpu.memory_space<vmem>>, %arg1: memref<8x128xf32, #tpu.memory_space<vmem>>, %arg2: memref<2x128xf32, #tpu.memory_space<vmem>>, %arg3: memref<2x2xf32, #tpu.memory_space<vmem>>) attributes {dimension_semantics = [], scalar_prefetch = 0 : i64, scratch_operands = 0 : i64, tpu.core_type = #tpu.core_type<tc>} {
    %c0 = arith.constant 0 : index
    %c0_0 = arith.constant 0 : index
    %c0_1 = arith.constant 0 : index
    %0 = vector.load %arg0[%c0, %c0_0, %c0_1] : memref<2x8x16xf32, #tpu.memory_space<vmem>>, vector<2x8x16xf32>
    %cst = arith.constant dense<0.000000e+00> : vector<2x8xf32>
    %1 = vector.multi_reduction <add>, %0, %cst [2] : vector<2x8x16xf32> to vector<2x8xf32>
    %cst_2 = arith.constant 1.600000e+01 : f32
    %2 = vector.broadcast %cst_2 : f32 to vector<2x8xf32>
    %3 = arith.divf %1, %2 : vector<2x8xf32>
    %c0_3 = arith.constant 0 : index
    %c0_4 = arith.constant 0 : index
    %4 = vector.load %arg1[%c0_3, %c0_4] : memref<8x128xf32, #tpu.memory_space<vmem>>, vector<8x128xf32>
    %cst_5 = arith.constant dense<0.000000e+00> : vector<2x128xf32>
    %5 = tpu.matmul %3, %4, %cst_5 {dimension_numbers = #tpu.dot_dimension_numbers<[1], [0], [0], [1], [0, 0, 1, 1], [], []>} : vector<2x8xf32>, vector<8x128xf32>, vector<2x128xf32> -> vector<2x128xf32>
    %cst_6 = arith.constant 0.000000e+00 : f32
    %6 = vector.broadcast %cst_6 : f32 to vector<2x128xf32>
    %7 = arith.maximumf %5, %6 : vector<2x128xf32>
    %c0_7 = arith.constant 0 : index
    %c0_8 = arith.constant 0 : index
    %8 = vector.load %arg2[%c0_7, %c0_8] : memref<2x128xf32, #tpu.memory_space<vmem>>, vector<2x128xf32>
    %cst_9 = arith.constant dense<0.000000e+00> : vector<2x2xf32>
    %9 = tpu.matmul %7, %8, %cst_9 {dimension_numbers = #tpu.dot_dimension_numbers<[1], [1], [0], [0], [0, 0, 1, 0], [], []>} : vector<2x128xf32>, vector<2x128xf32>, vector<2x2xf32> -> vector<2x2xf32>
    %c0_10 = arith.constant 0 : index
    %c0_11 = arith.constant 0 : index
    %10 = vector.load %arg3[%c0_10, %c0_11] : memref<2x2xf32, #tpu.memory_space<vmem>>, vector<2x2xf32>
    tpu.vector_store %arg3[%c0_10, %c0_11], %9 {strides = array<i32>} : memref<2x2xf32, #tpu.memory_space<vmem>>, vector<2x2xf32>,
    return
  }
}

</mosaic_0001>

<bundles_post_ra>
// kernel: tpu_custom_call.1
= control target key start
LH: loop header
LB: loop body
LE: loop exit
PB: predicated region body
PF: predicated region fallthrough
CT: control target
= control target key end

     0   :  { %8 = vsyncpa [#allocation3], 0  ;;  %s301_s0 = inlined_call_operand.hbm [shape: f32[2,8,16], index: 0, kind: input, shape index: {}]   ;;  %s302_s1 = inlined_call_operand.hbm [shape: f32[8,128], index: 1, kind: input, shape index: {}]   ;;  %s303_s2 = inlined_call_operand.hbm [shape: f32[2,128], index: 2, kind: input, shape index: {}]   ;;  %s304_s3 = inlined_call_operand.hbm [shape: f32[2,2], index: 3, kind: output, shape index: {}]  }
   0x1   :  { %9 = vsyncpa [#allocation6], 0  ;;  %s29_s14 = sshll.u32 %s302_s1, 4  ;;  %s30_s14 = int_to_ptr.hbm [resolvable:$true] %s29_s14 }
   0x2   :  { %10 = vsyncpa [#allocation4], 0  ;;  %s262_s15 = smov [#allocation5]   ;;  %s15_s19 = sshll.u32 %s301_s0, 4  ;;  %s16_s19 = int_to_ptr.hbm [resolvable:$true] %s15_s19 }
   0x3   :  { %s31_s16 = sshll.u32 %s262_s15, 4  ;;  %s263_s20 = smov [#allocation2]   ;;  %s32_s16 = int_to_ptr.vmem [resolvable:$true] %s31_s16 }
   0x4   :  { %34 = dma.hbm_to_vmem [thread:$0]  %s30_s14, 128, %s32_s16, [#allocation6]  }
   0x5   :  { %s17_s21 = sshll.u32 %s263_s20, 4  ;;  %s264_s22 = smov 128   ;;  %s18_s21 = int_to_ptr.vmem [resolvable:$true] %s17_s21 }
   0x6   :  { %s265_s23 = smov 8   ;;  %s40_s1 = sshll.u32 %s303_s2, 4  ;;  %s41_s1 = int_to_ptr.hbm [resolvable:$true] %s40_s1 }
   0x7   :  { %23 = dma.hbm_to_vmem [thread:$0]  %s16_s19, 256, %s18_s21, [#allocation3], %s264_s22, %s264_s22, %s265_s23  }
   0x8   :  { %s266_s26 = smov [#allocation7]  }
   0x9   :  { %s42_s27 = sshll.u32 %s266_s26, 4  ;;  %s43_s27 = int_to_ptr.vmem [resolvable:$true] %s42_s27 }
   0xa   :  { %45 = dma.hbm_to_vmem [thread:$0]  %s41_s1, 32, %s43_s27, [#allocation6]  }
   0xb   :  { %256 = dma.done.wait [#allocation3], 256  }
   0xc   :  { %257 = vsyncadd [#allocation3], 4294967040 }
   0xd   :  { %258 = dma.done.wait [#allocation6], 160  }
   0xe   :  { %259 = vsyncadd [#allocation6], 4294967136  ;;  %vm60_vm0 = vcmask 130048   ;;  %v58_v0 = vld [vmem:[#allocation2] sm:$0xff]  ;;  %v59_v2 = vld [vmem:[#allocation2 + $0x8] sm:$0xff]  ;;  %v267_v4 = vmov 16.0   ;;  %v79_v12 = vlaneseq }
   0xf   :  { %v61_v1 = vsel %vm60_vm0, %v58_v0, 0.0  ;;  %v64_v3 = vsel %vm60_vm0, %v59_v2, 0.0  ;;  %158 = vrcp.f32 %v267_v4  ;;  %v76_v5 = vld [vmem:[#allocation5] sm:$0xff]  ;;  %vm83_vm2 = vcmask 1041409   ;;  %v109_v21 = vld [vmem:[#allocation7] sm:$0x3] }
  0x10   :  { %62 = vadd.xlane.f32.xlu0 %v61_v1  ;;  %103 = vmatpush.msra.mxu0 %v76_v5  ;;  %v80_v14 = vand.u32 127, %v79_v12  ;;  %vm85_vm3 = vcmask 64512   ;;  %s268_s0 = smov [#allocation8]   ;;  %s139_s30 = sshll.u32 %s304_s3, 4  ;;  %vm130_vm4 = vcmask 9216   ;;  %s140_s30 = int_to_ptr.hbm [resolvable:$true] %s139_s30 }
  0x11   :  { %125 = vmatpush.xpose.msra.mxu1 %v109_v21  ;;  %s137_s2 = sshll.u32 %s268_s0, 4  ;;  %s138_s2 = int_to_ptr.vmem [resolvable:$true] %s137_s2 }
  0x15   :  { %v159_v6 = vpop.eup %158 }
  0x16   :  { %v68_v7 = vmul.f32 16.0, %v159_v6  ;;  %vm72_vm1 = vweird.f32 %v159_v6 }
  0x18   :  { %65 = vadd.xlane.f32.xlu0 %v64_v3  ;;  %v69_v8 = vsub.f32 1.0, %v68_v7 }
  0x1a   :  { %v70_v9 = vmul.f32 %v159_v6, %v69_v8 }
  0x1c   :  { %v71_v10 = vadd.f32 %v159_v6, %v70_v9 }
  0x1e   :  { %v73_v13 = vsel %vm72_vm1, %v159_v6, %v71_v10 }
  0x83   :  { %v63_v11 = vpop.xlane.xlu0 %62 }
  0x84   :  { %v74_v15 = vmul.f32 %v73_v13, %v63_v11 }
  0x86   :  { %v81_v18 = vperm.slane %v74_v15, %v80_v14 }
  0x8b   :  { %v66_v16 = vpop.xlane.xlu0 %65 }
  0x8c   :  { %v75_v17 = vmul.f32 %v73_v13, %v66_v16 }
  0x8e   :  { %v82_v19 = vperm.slane %v75_v17, %v80_v14 }
  0x90   :  { %v84_v20 = vsel %vm83_vm2, %v82_v19, %v81_v18 }
  0x91   :  { %150 = vmatmul.msk.f32.vlgmr.msra.gmra.mxu0 %vm85_vm3, %v84_v20 }
 0x10e   :  { %v105_v22 = vpop.f32.mrf.mxu0 }
 0x10f   :  { %v108_v23 = vmax.f32 %v105_v22, 0.0 }
 0x111   :  { %126 = vmatmul.f32.vlgmr.msra.gmra.mxu1 %v108_v23 }
 0x18e   :  { %v127_v24 = vpop.f32.mrf.mxu1 }
 0x18f   :  { %131 = vst.msk [vmem:[#allocation8] sm:$0x3] %vm130_vm4, %v127_v24 }
 0x190   :  { %142 = dma.vmem_to_hbm [thread:$0]  %s138_s2, 32, %s140_s30, [#allocation4]  }
 0x191   :  { %260 = dma.done.wait [#allocation4], 32  }
 0x192   :  { %261 = vsyncadd [#allocation4], 4294967264 }
 0x193   :  { %147 = vsyncpa [#allocation3], 1 }
 0x194   :  { %148 = vsyncpa [#allocation6], 1 }
 0x195   :  { %149 = vsyncpa [#allocation4], 1 }

</bundles_post_ra>
